<compile_context>
chip_gen: v5e
topology: v5e:2x2
jax: 0.10.0
libtpu: 0.0.40
codegen_flags: <defaults>
</compile_context>

<pallas_src>
import functools

import jax
import jax.numpy as jnp
from jax.experimental import pallas as pl
from jax.experimental.pallas import tpu as pltpu


def _round_up(a, b):
    return ((a + b - 1) // b) * b


def _ce_kernel(x_ref, t_ref, o_ref, *, n_rows, hard_labels):
    """Per-tile soft-target cross-entropy, accumulated into the output block.

    x_ref : (tile_n, C)  logits tile (any float dtype)
    t_ref : (tile_n, C)  soft targets  OR  (tile_n, 1) int32 labels
    o_ref : (1, tile_n, 1) f32 per-row partial sums (resident across the
            "arbitrary" batch-reduction axis; one block per TensorCore split)
    """
    ci = pl.program_id(0)
    ji = pl.program_id(1)
    steps = pl.num_programs(1)
    tile_n = x_ref.shape[0]

    @pl.when(ji == 0)
    def _():
        o_ref[...] = jnp.zeros_like(o_ref)

    # Logical row indices of this tile (for ragged-batch / duplicate-block masking).
    row0 = (ci * steps + ji) * tile_n
    rows = row0 + jax.lax.broadcasted_iota(jnp.int32, (tile_n, 1), 0)
    row_mask = rows < n_rows                                        # (tile_n, 1)

    x = x_ref[...].astype(jnp.float32)                              # (tile_n, C)
    x = jnp.where(row_mask, x, 0.0)                                 # sanitize OOB rows

    # Numerically-stable log-softmax over the class axis.
    m = jnp.max(x, axis=1, keepdims=True)                           # (tile_n, 1)
    lse = jnp.log(jnp.sum(jnp.exp(x - m), axis=1, keepdims=True)) + m
    logp = x - lse                                                  # (tile_n, C)

    if hard_labels:
        lab = t_ref[...]                                            # (tile_n, 1) int32
        cls = jax.lax.broadcasted_iota(jnp.int32, logp.shape, 1)    # (tile_n, C)
        contrib = jnp.where(cls == lab, -logp, 0.0)                 # gather -logp[label]
    else:
        t = jnp.where(row_mask, t_ref[...].astype(jnp.float32), 0.0)
        contrib = -t * logp

    per_row = jnp.sum(contrib, axis=1, keepdims=True)               # (tile_n, 1)
    per_row = jnp.where(row_mask, per_row, 0.0)

    o_ref[...] = o_ref[...] + per_row[None, :, :]


def cutmix_cross_entropy_loss(logits, target, size_average=True,
                              input_vmem_budget_bytes=8 * 1024 * 1024,
                              max_tile_n=4096):
    """JAX/Pallas equivalent of CutMixCrossEntropyLoss.forward.

    logits : (N, C) float (f32 or bf16)
    target : (N, C) soft targets (float)  OR  (N,) integer class labels
    """
    n, c = logits.shape

    hard = (target.ndim == 1)
    if hard:
        # Hard labels: keep them as int32 (N, 1); NO dense one-hot in HBM.
        tgt = target.astype(jnp.int32).reshape(n, 1)
        t_row_bytes = 4
        t_block_c = 1
    else:
        assert target.shape == (n, c)
        tgt = target
        t_row_bytes = c * tgt.dtype.itemsize
        t_block_c = c

    # Size the batch tile from a VMEM budget (2 pipeline buffers per input),
    # leaving headroom inside vmem_limit_bytes for f32 compute temporaries.
    x_row_bytes = c * logits.dtype.itemsize
    bytes_per_row = 2 * (x_row_bytes + t_row_bytes)
    tile_n = input_vmem_budget_bytes // max(bytes_per_row, 1)
    tile_n = min(int(tile_n), max_tile_n, _round_up(n, 8))
    tile_n = max(8, (tile_n // 8) * 8)

    nt = -(-n // tile_n)                    # number of batch tiles
    splits = 2 if nt >= 2 else 1            # v7x: shard the reduction over both TCs
    steps = -(-nt // splits)                # reduction steps per split

    def in_map(ci, ji):
        # Clamp so tail blocks of the second split never index out of range;
        # their (duplicate) contribution is zeroed by the in-kernel row mask.
        return (jnp.minimum(ci * steps + ji, nt - 1), 0)

    kernel = functools.partial(_ce_kernel, n_rows=n, hard_labels=hard)

    partials = pl.pallas_call(
        kernel,
        out_shape=jax.ShapeDtypeStruct((splits, tile_n, 1), jnp.float32),
        grid_spec=pltpu.PrefetchScalarGridSpec(
            num_scalar_prefetch=0,
            grid=(splits, steps),
            in_specs=[
                pl.BlockSpec((tile_n, c), in_map),
                pl.BlockSpec((tile_n, t_block_c), in_map),
            ],
            out_specs=pl.BlockSpec((1, tile_n, 1), lambda ci, ji: (ci, 0, 0)),
        ),
        compiler_params=pltpu.CompilerParams(
            dimension_semantics=("parallel", "arbitrary"),
            vmem_limit_bytes=32 * 1024 * 1024,
        ),
    )(logits, tgt)

    total = jnp.sum(partials)
    return total / jnp.float32(n) if size_average else total


def _reference(logits, target, size_average=True):
    if target.ndim == 1:
        target = jax.nn.one_hot(target, logits.shape[-1], dtype=jnp.float32)
    logp = jax.nn.log_softmax(logits.astype(jnp.float32), axis=1)
    per_row = jnp.sum(-target.astype(jnp.float32) * logp, axis=1)
    return jnp.mean(per_row) if size_average else jnp.sum(per_row)


if __name__ == "__main__":
    key = jax.random.PRNGKey(0)
    k1, k2, k3, k4, k5 = jax.random.split(key, 5)

    # Small shapes consistent with the module: batch=16, classes=32.
    N, C = 16, 32
    logits = jax.random.normal(k1, (N, C), dtype=jnp.float32) * 2.0
    soft = jax.nn.softmax(jax.random.normal(k2, (N, C), dtype=jnp.float32), axis=1)
    hard = jax.random.randint(k3, (N,), 0, C)

    loss_soft = jax.block_until_ready(
        cutmix_cross_entropy_loss(logits, soft, size_average=True))
    loss_soft_sum = jax.block_until_ready(
        cutmix_cross_entropy_loss(logits, soft, size_average=False))
    loss_hard = jax.block_until_ready(
        cutmix_cross_entropy_loss(logits, hard, size_average=True))

    assert jnp.allclose(loss_soft, _reference(logits, soft, True), rtol=1e-5, atol=1e-5)
    assert jnp.allclose(loss_soft_sum, _reference(logits, soft, False), rtol=1e-5, atol=1e-5)
    assert jnp.allclose(loss_hard, _reference(logits, hard, True), rtol=1e-5, atol=1e-5)

    # bf16 logits + ragged batch (exercises in-kernel row masking + hard-label gather).
    N2 = 13
    logits2 = (jax.random.normal(k4, (N2, C), dtype=jnp.float32) * 2.0).astype(jnp.bfloat16)
    hard2 = jax.random.randint(k5, (N2,), 0, C)
    loss_bf16 = jax.block_until_ready(
        cutmix_cross_entropy_loss(logits2, hard2, size_average=True))
    assert jnp.allclose(loss_bf16, _reference(logits2, hard2, True), rtol=1e-4, atol=1e-4)

    print("KERNEL_OK")
</pallas_src>

<mosaic_0001>
module attributes {stable_mosaic.version = 11 : i64} {
  func.func @_ce_kernel(%arg0: i32, %arg1: i32, %arg2: memref<16x32xf32, #tpu.memory_space<vmem>>, %arg3: memref<16x32xf32, #tpu.memory_space<vmem>>, %arg4: memref<1x16x1xf32, #tpu.memory_space<vmem>>) attributes {dimension_semantics = [#tpu.dimension_semantics<parallel>, #tpu.dimension_semantics<arbitrary>], iteration_bounds = array<i64: 1, 1>, scalar_prefetch = 0 : i64, scratch_operands = 0 : i64, tpu.core_type = #tpu.core_type<tc>, window_params = [{transform_indices = @transform_0, window_bounds = array<i64: 16, 32>}, {transform_indices = @transform_1, window_bounds = array<i64: 16, 32>}, {transform_indices = @transform_2, window_bounds = array<i64: 1, 16, 1>}]} {
    %c0_i32 = arith.constant 0 : i32
    %0 = arith.cmpi eq, %arg1, %c0_i32 : i32
    %1 = arith.extui %0 : i1 to i32
    %c0_i32_0 = arith.constant 0 : i32
    %2 = arith.cmpi ne, %1, %c0_i32_0 : i32
    scf.if %2 {
      %cst_17 = arith.constant 0.000000e+00 : f32
      %43 = vector.broadcast %cst_17 : f32 to vector<1x16x1xf32>
      %c0_18 = arith.constant 0 : index
      %c0_19 = arith.constant 0 : index
      %c0_20 = arith.constant 0 : index
      %44 = vector.load %arg4[%c0_18, %c0_19, %c0_20] : memref<1x16x1xf32, #tpu.memory_space<vmem>>, vector<1x16x1xf32>
      tpu.vector_store %arg4[%c0_18, %c0_19, %c0_20], %43 {strides = array<i32>} : memref<1x16x1xf32, #tpu.memory_space<vmem>>, vector<1x16x1xf32>,
    } else {
    }
    %c1_i32 = arith.constant 1 : i32
    %3 = arith.muli %arg0, %c1_i32 : i32
    %4 = arith.addi %3, %arg1 : i32
    %c16_i32 = arith.constant 16 : i32
    %5 = arith.muli %4, %c16_i32 : i32
    %6 = tpu.iota {dimensions = array<i32: 0>} : vector<16x1xi32>
    %7 = vector.broadcast %5 : i32 to vector<16x1xi32>
    %8 = arith.addi %7, %6 : vector<16x1xi32>
    %c16_i32_1 = arith.constant 16 : i32
    %9 = vector.broadcast %c16_i32_1 : i32 to vector<16x1xi32>
    %10 = arith.cmpi slt, %8, %9 : vector<16x1xi32>
    %c0 = arith.constant 0 : index
    %c0_2 = arith.constant 0 : index
    %11 = vector.load %arg2[%c0, %c0_2] : memref<16x32xf32, #tpu.memory_space<vmem>>, vector<16x32xf32>
    %cst = arith.constant 0.000000e+00 : f32
    %12 = vector.shape_cast %10 : vector<16x1xi1> to vector<16x1xi1>
    %13 = vector.broadcast %12 : vector<16x1xi1> to vector<16x32xi1>
    %14 = vector.broadcast %cst : f32 to vector<16x32xf32>
    %15 = arith.select %13, %11, %14 : vector<16x32xi1>, vector<16x32xf32>
    %cst_3 = arith.constant dense<0xFF800000> : vector<16xf32>
    %16 = vector.multi_reduction <maximumf>, %15, %cst_3 [1] : vector<16x32xf32> to vector<16xf32>
    %17 = vector.shape_cast %16 : vector<16xf32> to vector<16x1xf32>
    %18 = vector.broadcast %17 : vector<16x1xf32> to vector<16x32xf32>
    %19 = arith.subf %15, %18 : vector<16x32xf32>
    %20 = math.exp %19 : vector<16x32xf32>
    %cst_4 = arith.constant dense<0.000000e+00> : vector<16xf32>
    %21 = vector.multi_reduction <add>, %20, %cst_4 [1] : vector<16x32xf32> to vector<16xf32>
    %22 = vector.shape_cast %21 : vector<16xf32> to vector<16x1xf32>
    %23 = math.log %22 : vector<16x1xf32>
    %24 = arith.addf %23, %17 : vector<16x1xf32>
    %25 = vector.broadcast %24 : vector<16x1xf32> to vector<16x32xf32>
    %26 = arith.subf %15, %25 : vector<16x32xf32>
    %c0_5 = arith.constant 0 : index
    %c0_6 = arith.constant 0 : index
    %27 = vector.load %arg3[%c0_5, %c0_6] : memref<16x32xf32, #tpu.memory_space<vmem>>, vector<16x32xf32>
    %cst_7 = arith.constant 0.000000e+00 : f32
    %28 = vector.shape_cast %10 : vector<16x1xi1> to vector<16x1xi1>
    %29 = vector.broadcast %28 : vector<16x1xi1> to vector<16x32xi1>
    %30 = vector.broadcast %cst_7 : f32 to vector<16x32xf32>
    %31 = arith.select %29, %27, %30 : vector<16x32xi1>, vector<16x32xf32>
    %cst_8 = arith.constant 0.000000e+00 : f32
    %32 = vector.broadcast %cst_8 : f32 to vector<16x32xf32>
    %33 = arith.subf %32, %31 : vector<16x32xf32>
    %34 = arith.mulf %33, %26 : vector<16x32xf32>
    %cst_9 = arith.constant dense<0.000000e+00> : vector<16xf32>
    %35 = vector.multi_reduction <add>, %34, %cst_9 [1] : vector<16x32xf32> to vector<16xf32>
    %36 = vector.shape_cast %35 : vector<16xf32> to vector<16x1xf32>
    %cst_10 = arith.constant 0.000000e+00 : f32
    %37 = vector.broadcast %cst_10 : f32 to vector<16x1xf32>
    %38 = arith.select %10, %36, %37 : vector<16x1xi1>, vector<16x1xf32>
    %c0_11 = arith.constant 0 : index
    %c0_12 = arith.constant 0 : index
    %c0_13 = arith.constant 0 : index
    %39 = vector.load %arg4[%c0_11, %c0_12, %c0_13] : memref<1x16x1xf32, #tpu.memory_space<vmem>>, vector<1x16x1xf32>
    %40 = vector.shape_cast %38 : vector<16x1xf32> to vector<1x16x1xf32>
    %41 = arith.addf %39, %40 : vector<1x16x1xf32>
    %c0_14 = arith.constant 0 : index
    %c0_15 = arith.constant 0 : index
    %c0_16 = arith.constant 0 : index
    %42 = vector.load %arg4[%c0_14, %c0_15, %c0_16] : memref<1x16x1xf32, #tpu.memory_space<vmem>>, vector<1x16x1xf32>
    tpu.vector_store %arg4[%c0_14, %c0_15, %c0_16], %41 {strides = array<i32>} : memref<1x16x1xf32, #tpu.memory_space<vmem>>, vector<1x16x1xf32>,
    return
  }
  func.func @transform_0(%arg0: i32, %arg1: i32) -> (i32, i32) {
    %c1_i32 = arith.constant 1 : i32
    %0 = arith.muli %arg0, %c1_i32 : i32
    %1 = arith.addi %0, %arg1 : i32
    %c0_i32 = arith.constant 0 : i32
    %2 = arith.minsi %1, %c0_i32 : i32
    %c0_i32_0 = arith.constant 0 : i32
    %c0_i32_1 = arith.constant 0 : i32
    return %2, %c0_i32_0 : i32, i32
  }
  func.func @transform_1(%arg0: i32, %arg1: i32) -> (i32, i32) {
    %c1_i32 = arith.constant 1 : i32
    %0 = arith.muli %arg0, %c1_i32 : i32
    %1 = arith.addi %0, %arg1 : i32
    %c0_i32 = arith.constant 0 : i32
    %2 = arith.minsi %1, %c0_i32 : i32
    %c0_i32_0 = arith.constant 0 : i32
    %c0_i32_1 = arith.constant 0 : i32
    return %2, %c0_i32_0 : i32, i32
  }
  func.func @transform_2(%arg0: i32, %arg1: i32) -> (i32, i32, i32) {
    %c0_i32 = arith.constant 0 : i32
    %c0_i32_0 = arith.constant 0 : i32
    %c0_i32_1 = arith.constant 0 : i32
    return %arg0, %c0_i32, %c0_i32_0 : i32, i32, i32
  }
}

</mosaic_0001>

<bundles_post_ra>
// kernel: tpu_custom_call.1
= control target key start
LH: loop header
LB: loop body
LE: loop exit
PB: predicated region body
PF: predicated region fallthrough
CT: control target
= control target key end

     0   :  { %7 = vsyncpa [#allocation3], 0  ;;  %s267_s0 = inlined_call_operand.hbm [shape: f32[16,32], index: 0, kind: input, shape index: {}]   ;;  %s268_s1 = inlined_call_operand.hbm [shape: f32[16,32], index: 1, kind: input, shape index: {}]   ;;  %s269_s2 = inlined_call_operand.vmem [shape: f32[1,16,1], index: 2, kind: output, shape index: {}]  }
   0x1   :  { %s19_s11 = sshll.u32 %s267_s0, 4  ;;  %s20_s11 = int_to_ptr.hbm [resolvable:$true] %s19_s11 }
   0x2   :  { %8 = vsyncpa [#allocation5], 0  ;;  %s213_s12 = smov [#allocation2]   ;;  %s38_s16 = sshll.u32 %s268_s1, 4  ;;  %s39_s16 = int_to_ptr.hbm [resolvable:$true] %s38_s16 }
   0x3   :  { %s21_s13 = sshll.u32 %s213_s12, 4  ;;  %s214_s17 = smov 128   ;;  %s22_s13 = int_to_ptr.vmem [resolvable:$true] %s21_s13 }
   0x4   :  { %s215_s18 = smov 8   ;;  %s216_s19 = smov [#allocation4]  }
   0x5   :  { %27 = dma.hbm_to_vmem [thread:$0]  %s20_s11, 256, %s22_s13, [#allocation3], %s214_s17, %s214_s17, %s215_s18  }
   0x6   :  { %s40_s20 = sshll.u32 %s216_s19, 4  ;;  %s41_s20 = int_to_ptr.vmem [resolvable:$true] %s40_s20 }
   0x7   :  { %46 = dma.hbm_to_vmem [thread:$0]  %s39_s16, 256, %s41_s20, [#allocation5], %s214_s17, %s214_s17, %s215_s18  }
   0x8   :  { %209 = dma.done.wait [#allocation3], 256  }
   0x9   :  { %210 = vsyncadd [#allocation3], 4294967040 }
   0xa   :  { %211 = dma.done.wait [#allocation5], 256  }
   0xb   :  { %212 = vsyncadd [#allocation5], 4294967040  ;;  %vm88_vm0 = vcmask 261120   ;;  %v80_v0 = vld [vmem:[#allocation2] sm:$0xff]  ;;  %v81_v2 = vld [vmem:[#allocation2 + $0x8] sm:$0xff]  ;;  %vm67_vm1 = vcmask 7168  }
   0xc   :  { %v89_v1 = vsel %vm88_vm0, %v80_v0, -inf  ;;  %v92_v3 = vsel %vm88_vm0, %v81_v2, -inf  ;;  %v217_v14 = vmov 0.0   ;;  %v115_v17 = vld [vmem:[#allocation4] sm:$0xff]  ;;  %v116_v25 = vld [vmem:[#allocation4 + $0x8] sm:$0xff] }
   0xd   :  { %90 = vmax.xlane.f32.xlu0 %v89_v1  ;;  %68 = vst.msk [vmem:[%s269_s2] sm:$0xff] %vm67_vm1, %v217_v14  ;;  %v119_v21 = vsub.f32 0.0, %v115_v17  ;;  %v120_v29 = vsub.f32 0.0, %v116_v25 }
   0xe   :  { %69 = vst.msk [vmem:[%s269_s2 + $0x8] sm:$0xff] %vm67_vm1, %v217_v14 }
  0x14   :  { %v131_v33 = vld [vmem:[%s269_s2] sm:$0xff] }
  0x15   :  { %93 = vmax.xlane.f32.xlu0 %v92_v3  ;;  %v132_v36 = vld [vmem:[%s269_s2 + $0x8] sm:$0xff] }
  0x80   :  { %v91_v4 = vpop.xlane.xlu0 %90 }
  0x81   :  { %v95_v5 = vsub.f32 %v80_v0, %v91_v4 }
  0x83   :  { %v97_v6 = vmul.f32 1.442695, %v95_v5 }
  0x85   :  { %153 = vpow2.f32 %v97_v6 }
  0x88   :  { %v94_v7 = vpop.xlane.xlu0 %93 }
  0x89   :  { %v96_v8 = vsub.f32 %v81_v2, %v94_v7 }
  0x8b   :  { %v154_v9 = vpop.eup %153  ;;  %v99_v10 = vmul.f32 1.442695, %v96_v8 }
  0x8c   :  { %v101_v11 = vsel %vm88_vm0, %v154_v9, 0.0 }
  0x8d   :  { %155 = vpow2.f32 %v99_v10  ;;  %102 = vadd.xlane.f32.xlu1 %v101_v11 }
  0x93   :  { %v156_v12 = vpop.eup %155 }
  0x94   :  { %v104_v13 = vsel %vm88_vm0, %v156_v12, 0.0 }
  0x95   :  { %105 = vadd.xlane.f32.xlu1 %v104_v13 }
 0x100   :  { %v103_v15 = vpop.xlane.xlu1 %102 }
 0x101   :  { %157 = vlog2.f32 %v103_v15 }
 0x107   :  { %v158_v16 = vpop.eup %157 }
 0x108   :  { %v108_v18 = vmul.f32 0.6931472, %v158_v16  ;;  %v106_v19 = vpop.xlane.xlu1 %105 }
 0x109   :  { %159 = vlog2.f32 %v106_v19 }
 0x10a   :  { %v111_v20 = vadd.f32 %v108_v18, %v91_v4 }
 0x10c   :  { %v113_v22 = vsub.f32 %v80_v0, %v111_v20 }
 0x10e   :  { %v121_v23 = vmul.f32 %v119_v21, %v113_v22 }
 0x10f   :  { %v160_v24 = vpop.eup %159 }
 0x110   :  { %v110_v26 = vmul.f32 0.6931472, %v160_v24  ;;  %v123_v27 = vsel %vm88_vm0, %v121_v23, 0.0 }
 0x111   :  { %124 = vadd.xlane.f32.xlu2 %v123_v27 }
 0x112   :  { %v112_v28 = vadd.f32 %v110_v26, %v94_v7 }
 0x114   :  { %v114_v30 = vsub.f32 %v81_v2, %v112_v28 }
 0x116   :  { %v122_v31 = vmul.f32 %v120_v29, %v114_v30 }
 0x118   :  { %v126_v32 = vsel %vm88_vm0, %v122_v31, 0.0 }
 0x119   :  { %127 = vadd.xlane.f32.xlu2 %v126_v32 }
 0x184   :  { %v125_v34 = vpop.xlane.xlu2 %124 }
 0x185   :  { %v133_v35 = vadd.f32 %v131_v33, %v125_v34 }
 0x187   :  { %136 = vst.msk [vmem:[%s269_s2] sm:$0xff] %vm67_vm1, %v133_v35 }
 0x18c   :  { %v128_v37 = vpop.xlane.xlu2 %127 }
 0x18d   :  { %v134_v38 = vadd.f32 %v132_v36, %v128_v37 }
 0x18f   :  { %137 = vst.msk [vmem:[%s269_s2 + $0x8] sm:$0xff] %vm67_vm1, %v134_v38 }
 0x190   :  { %142 = vsyncpa [#allocation3], 1 }
 0x191   :  { %143 = vsyncpa [#allocation5], 1 }

</bundles_post_ra>
